<compile_context>
chip_gen: v7x
topology: tpu7x:2x2x1
jax: 0.10.0
libtpu: 0.0.40
codegen_flags: <defaults>
</compile_context>

<pallas_src>
import functools
import numpy as np
import jax
import jax.numpy as jnp
from jax.experimental import pallas as pl
from jax.experimental.pallas import tpu as pltpu

COLORS = 50

TM_MAX = 128   # max rows per matmul tile
TK_MAX = 512   # max contraction tile (lane dim of A)


def _tn_max_for_device():
    # v5e MXU is 4x128^2 -> 128-wide N tiles already fill it; v6e/v7x MXUs are 256 wide.
    try:
        kind = jax.devices()[0].device_kind.lower()
    except Exception:
        return 256
    if "v5 lite" in kind or "v5e" in kind or "v5lite" in kind:
        return 128
    return 256


TN_MAX = _tn_max_for_device()


def rup(x, m):
    return ((x + m - 1) // m) * m


def pick_lane_tile(dim, max_tile):
    """Largest multiple of 128 <= max_tile that divides rup(dim, 128)."""
    dp = rup(dim, 128)
    c = max_tile
    while c >= 128:
        if dp % c == 0:
            return c, dp
        c -= 128
    return 128, dp


def pick_row_tile(m):
    """8-aligned row tile <= TM_MAX with minimal zero padding."""
    dp = rup(m, 8)
    if dp <= TM_MAX:
        return dp, dp
    c = TM_MAX
    while c >= 64:
        if dp % c == 0:
            return c, dp
        c -= 8
    return TM_MAX, rup(m, TM_MAX)


# --------------------------------------------------------------------------
# Pallas kernels
# --------------------------------------------------------------------------
def mm_kernel_1k(a_ref, b_ref, s_ref, c_ref, o_ref, *, relu):
    # single K step: no accumulator scratch needed
    y = jnp.dot(a_ref[...], b_ref[...], preferred_element_type=jnp.float32)
    y = y * s_ref[...] + c_ref[...]
    if relu:
        y = jnp.maximum(y, 0.0)
    o_ref[...] = y.astype(o_ref.dtype)


def mm_res_kernel_1k(a_ref, b_ref, s_ref, c_ref, r_ref, o_ref, *, relu):
    y = jnp.dot(a_ref[...], b_ref[...], preferred_element_type=jnp.float32)
    y = y * s_ref[...] + c_ref[...] + r_ref[...]
    if relu:
        y = jnp.maximum(y, 0.0)
    o_ref[...] = y.astype(o_ref.dtype)


def mm_kernel_acc(a_ref, b_ref, s_ref, c_ref, o_ref, acc_ref, *, relu):
    @pl.when(pl.program_id(2) == 0)
    def _():
        acc_ref[...] = jnp.zeros_like(acc_ref)

    acc_ref[...] += jnp.dot(a_ref[...], b_ref[...], preferred_element_type=jnp.float32)

    @pl.when(pl.program_id(2) == pl.num_programs(2) - 1)
    def _():
        y = acc_ref[...] * s_ref[...] + c_ref[...]
        if relu:
            y = jnp.maximum(y, 0.0)
        o_ref[...] = y.astype(o_ref.dtype)


def mm_res_kernel_acc(a_ref, b_ref, s_ref, c_ref, r_ref, o_ref, acc_ref, *, relu):
    @pl.when(pl.program_id(2) == 0)
    def _():
        acc_ref[...] = jnp.zeros_like(acc_ref)

    acc_ref[...] += jnp.dot(a_ref[...], b_ref[...], preferred_element_type=jnp.float32)

    @pl.when(pl.program_id(2) == pl.num_programs(2) - 1)
    def _():
        y = acc_ref[...] * s_ref[...] + c_ref[...] + r_ref[...]
        if relu:
            y = jnp.maximum(y, 0.0)
        o_ref[...] = y.astype(o_ref.dtype)


def maxpool9_kernel(*refs):
    # 9 input row-tiles (one per 3x3 tap), running element-wise max on the VPU.
    o_ref = refs[-1]
    m = refs[0][...]
    for r in refs[1:-1]:
        m = jnp.maximum(m, r[...])
    o_ref[...] = m


def lerp_kernel(x0_ref, x1_ref, w_ref, o_ref):
    # o = x0 + w * (x1 - x0), w broadcast along the channel (lane) dim.
    o_ref[...] = x0_ref[...] + w_ref[...] * (x1_ref[...] - x0_ref[...])


# --------------------------------------------------------------------------
# Matmul dispatcher (adaptive tiles, bf16 operands, fused epilogue)
# --------------------------------------------------------------------------
def matmul_prepped(a, cp, relu, residual=None):
    """a:(M,K) f32 @ prepped weight cp (pre-padded bf16 (Kp,Np)), fused scale/bias,
    optional fused residual add, optional ReLU.  Returns (M, N) f32."""
    M, K = a.shape
    Kp, Np, tk, tn = cp["Kp"], cp["Np"], cp["tk"], cp["tn"]
    Ncols = cp["N"]
    tm, Mp = pick_row_tile(M)

    a_p = a.astype(jnp.bfloat16)
    if Mp != M or Kp != K:
        a_p = jnp.pad(a_p, ((0, Mp - M), (0, Kp - K)))
    args = [a_p, cp["b"], cp["s"], cp["c"]]

    nk = Kp // tk
    if nk == 1:
        grid = (Mp // tm, Np // tn)
        sem = ("parallel", "parallel")
        in_specs = [
            pl.BlockSpec((tm, tk), lambda i, j: (i, 0)),
            pl.BlockSpec((tk, tn), lambda i, j: (0, j)),
            pl.BlockSpec((1, tn), lambda i, j: (0, j)),
            pl.BlockSpec((1, tn), lambda i, j: (0, j)),
        ]
        out_spec = pl.BlockSpec((tm, tn), lambda i, j: (i, j))
        scratch = []
        if residual is None:
            kern = functools.partial(mm_kernel_1k, relu=relu)
        else:
            in_specs.append(pl.BlockSpec((tm, tn), lambda i, j: (i, j)))
            kern = functools.partial(mm_res_kernel_1k, relu=relu)
    else:
        grid = (Mp // tm, Np // tn, nk)
        sem = ("parallel", "parallel", "arbitrary")
        in_specs = [
            pl.BlockSpec((tm, tk), lambda i, j, k: (i, k)),
            pl.BlockSpec((tk, tn), lambda i, j, k: (k, j)),
            pl.BlockSpec((1, tn), lambda i, j, k: (0, j)),
            pl.BlockSpec((1, tn), lambda i, j, k: (0, j)),
        ]
        out_spec = pl.BlockSpec((tm, tn), lambda i, j, k: (i, j))
        scratch = [pltpu.VMEM((tm, tn), jnp.float32)]
        if residual is None:
            kern = functools.partial(mm_kernel_acc, relu=relu)
        else:
            in_specs.append(pl.BlockSpec((tm, tn), lambda i, j, k: (i, j)))
            kern = functools.partial(mm_res_kernel_acc, relu=relu)

    if residual is not None:
        r_p = residual.astype(jnp.float32)
        if r_p.shape != (Mp, Np):
            r_p = jnp.pad(r_p, ((0, Mp - M), (0, Np - Ncols)))
        args.append(r_p)

    out = pl.pallas_call(
        kern,
        out_shape=jax.ShapeDtypeStruct((Mp, Np), jnp.float32),
        grid_spec=pltpu.PrefetchScalarGridSpec(
            num_scalar_prefetch=0,
            grid=grid,
            in_specs=in_specs,
            out_specs=out_spec,
            scratch_shapes=scratch,
        ),
        compiler_params=pltpu.CompilerParams(dimension_semantics=sem),
    )(*args)
    return out[:M, :Ncols]


# --------------------------------------------------------------------------
# Conv / pool / resize wrappers (thin JAX glue, compute in Pallas)
# --------------------------------------------------------------------------
def extract_patches(x, kh, kw, stride, padding, dilation):
    # x: NHWC.  Returns (N*Ho*Wo, kh*kw*Cin) with last-dim order (kh, kw, Cin).
    N, H, W, C = x.shape
    xp = jnp.pad(x, ((0, 0), (padding, padding), (padding, padding), (0, 0)))
    Ho = (H + 2 * padding - dilation * (kh - 1) - 1) // stride + 1
    Wo = (W + 2 * padding - dilation * (kw - 1) - 1) // stride + 1
    cols = []
    for i in range(kh):
        for j in range(kw):
            di, dj = i * dilation, j * dilation
            cols.append(xp[:, di:di + stride * (Ho - 1) + 1:stride,
                              dj:dj + stride * (Wo - 1) + 1:stride, :])
    p = jnp.stack(cols, axis=3)  # (N, Ho, Wo, kh*kw, C)
    return p.reshape(N * Ho * Wo, kh * kw * C), (N, Ho, Wo)


def conv_bn(x, cp, stride=1, padding=0, dilation=1, relu=True, residual=None):
    """Conv2d + folded BN scale/bias + optional ReLU (+ optional fused residual add)."""
    kh, kw = cp["kh"], cp["kw"]
    if kh == 1 and kw == 1 and padding == 0:
        # 1x1 conv: no im2col; stride handled by a strided slice.
        if stride != 1:
            x = x[:, ::stride, ::stride, :]
        N, Ho, Wo, _ = x.shape
        patches = x.reshape(N * Ho * Wo, cp["K"])
    else:
        patches, (N, Ho, Wo) = extract_patches(x, kh, kw, stride, padding, dilation)
        # TODO(synk): for large inputs the 3x3 im2col could be fused into the matmul
        # (tap index as a K-grid axis) to avoid the 9x patch materialization.
    res = None
    if residual is not None:
        res = residual.reshape(N * Ho * Wo, cp["N"])
    y = matmul_prepped(patches, cp, relu=relu, residual=res)
    return y.reshape(N, Ho, Wo, cp["N"])


def maxpool2d_3x3_s2_p1(x):
    N, H, W, C = x.shape
    xp = jnp.pad(x, ((0, 0), (1, 1), (1, 1), (0, 0)), constant_values=-jnp.inf)
    Ho = (H + 2 - 3) // 2 + 1
    Wo = (W + 2 - 3) // 2 + 1
    cols = [xp[:, i:i + 2 * (Ho - 1) + 1:2, j:j + 2 * (Wo - 1) + 1:2, :].reshape(-1, C)
            for i in range(3) for j in range(3)]
    M = N * Ho * Wo
    tm = min(512, rup(M, 8))
    Mp = rup(M, tm)
    if Mp != M:
        cols = [jnp.pad(c, ((0, Mp - M), (0, 0))) for c in cols]
    out = pl.pallas_call(
        maxpool9_kernel,
        out_shape=jax.ShapeDtypeStruct((Mp, C), x.dtype),
        grid_spec=pltpu.PrefetchScalarGridSpec(
            num_scalar_prefetch=0,
            grid=(Mp // tm,),
            in_specs=[pl.BlockSpec((tm, C), lambda i: (i, 0))] * 9,
            out_specs=pl.BlockSpec((tm, C), lambda i: (i, 0)),
        ),
        compiler_params=pltpu.CompilerParams(dimension_semantics=("parallel",)),
    )(*cols)
    return out[:M].reshape(N, Ho, Wo, C)


def _lerp_rows(x0, x1, w):
    # x0, x1: (M, C) f32; w: (M, 1) f32 -> x0 + w*(x1-x0), row-tiled Pallas kernel.
    M, C = x0.shape
    tm = min(512, rup(M, 8))
    Mp = rup(M, tm)
    if Mp != M:
        pad = ((0, Mp - M), (0, 0))
        x0, x1, w = jnp.pad(x0, pad), jnp.pad(x1, pad), jnp.pad(w, pad)
    out = pl.pallas_call(
        lerp_kernel,
        out_shape=jax.ShapeDtypeStruct((Mp, C), jnp.float32),
        grid_spec=pltpu.PrefetchScalarGridSpec(
            num_scalar_prefetch=0,
            grid=(Mp // tm,),
            in_specs=[pl.BlockSpec((tm, C), lambda i: (i, 0)),
                      pl.BlockSpec((tm, C), lambda i: (i, 0)),
                      pl.BlockSpec((tm, 1), lambda i: (i, 0))],
            out_specs=pl.BlockSpec((tm, C), lambda i: (i, 0)),
        ),
        compiler_params=pltpu.CompilerParams(dimension_semantics=("parallel",)),
    )(x0, x1, w)
    return out[:M]


def _interp_indices(out_size, in_size):
    # PyTorch F.interpolate(mode="bilinear", align_corners=False) source indices/weights.
    if in_size == 1:
        i0 = np.zeros(out_size, np.int32)
        return jnp.asarray(i0), jnp.asarray(i0), jnp.zeros((out_size,), jnp.float32)
    scale = in_size / out_size
    s = (np.arange(out_size, dtype=np.float64) + 0.5) * scale - 0.5
    s = np.clip(s, 0.0, in_size - 1)
    i0 = np.floor(s).astype(np.int32)
    i1 = np.minimum(i0 + 1, in_size - 1).astype(np.int32)
    w = (s - i0).astype(np.float32)
    return jnp.asarray(i0), jnp.asarray(i1), jnp.asarray(w)


def bilinear_resize(x, out_h, out_w):
    # Separable bilinear upsampling as two gather + Pallas lerp passes.
    N, H, W, C = x.shape
    # H pass
    i0, i1, wh = _interp_indices(out_h, H)
    x0 = jnp.take(x, i0, axis=1).reshape(-1, C)
    x1 = jnp.take(x, i1, axis=1).reshape(-1, C)
    wr = jnp.broadcast_to(wh[None, :, None], (N, out_h, W)).reshape(-1, 1)
    y = _lerp_rows(x0, x1, wr).reshape(N, out_h, W, C)
    # W pass
    i0, i1, ww = _interp_indices(out_w, W)
    x0 = jnp.take(y, i0, axis=2).reshape(-1, C)
    x1 = jnp.take(y, i1, axis=2).reshape(-1, C)
    wr = jnp.broadcast_to(ww[None, None, :], (N, out_h, out_w)).reshape(-1, 1)
    return _lerp_rows(x0, x1, wr).reshape(N, out_h, out_w, C)


# --------------------------------------------------------------------------
# Deterministic parameter construction (shapes follow torchvision fcn_resnet50),
# weights pre-reshaped / pre-padded / pre-cast to bf16 ONCE here.
# --------------------------------------------------------------------------
class KeyGen:
    def __init__(self, seed=0):
        self._key = jax.random.PRNGKey(seed)

    def __call__(self):
        self._key, sub = jax.random.split(self._key)
        return sub


def make_conv_w(kg, kh, kw, cin, cout):
    fan_in = kh * kw * cin
    return jax.random.normal(kg(), (kh, kw, cin, cout), jnp.float32) * float(np.sqrt(2.0 / fan_in))


def make_bn(kg, c):
    # eval-mode BN folded into per-channel scale/bias
    eps = 1e-5
    gamma = 1.0 + 0.1 * jax.random.normal(kg(), (c,), jnp.float32)
    beta = 0.1 * jax.random.normal(kg(), (c,), jnp.float32)
    running_mean = jnp.zeros((c,), jnp.float32)
    running_var = jnp.ones((c,), jnp.float32)
    scale = gamma / jnp.sqrt(running_var + eps)
    bias = beta - running_mean * scale
    return scale, bias


def prep_conv(w, scale, bias):
    """Reshape/pad/cast a conv weight + per-channel affine once (tile-aligned, bf16)."""
    kh, kw, cin, cout = w.shape
    K, Nc = kh * kw * cin, cout
    tk, Kp = pick_lane_tile(K, TK_MAX)
    tn, Np = pick_lane_tile(Nc, TN_MAX)
    b = jnp.pad(w.reshape(K, Nc), ((0, Kp - K), (0, Np - Nc))).astype(jnp.bfloat16)
    s = jnp.pad(scale.reshape(1, -1).astype(jnp.float32), ((0, 0), (0, Np - Nc)))
    c = jnp.pad(bias.reshape(1, -1).astype(jnp.float32), ((0, 0), (0, Np - Nc)))
    return {"kh": kh, "kw": kw, "K": K, "N": Nc, "Kp": Kp, "Np": Np,
            "tk": tk, "tn": tn, "b": b, "s": s, "c": c}


def make_conv_bn_prepped(kg, kh, kw, cin, cout):
    w = make_conv_w(kg, kh, kw, cin, cout)
    s, b = make_bn(kg, cout)
    return prep_conv(w, s, b)


def make_bottleneck(kg, inplanes, planes, stride, dilation, has_ds):
    p = {"stride": stride, "dilation": dilation}
    width = planes
    p["c1"] = make_conv_bn_prepped(kg, 1, 1, inplanes, width)
    p["c2"] = make_conv_bn_prepped(kg, 3, 3, width, width)
    p["c3"] = make_conv_bn_prepped(kg, 1, 1, width, planes * 4)
    if has_ds:
        p["cd"] = make_conv_bn_prepped(kg, 1, 1, inplanes, planes * 4)
    return p


def make_layer(kg, state, planes, blocks, stride=1, dilate=False):
    previous_dilation = state["dilation"]
    if dilate:                       # replace_stride_with_dilation
        state["dilation"] *= stride
        stride = 1
    has_ds = stride != 1 or state["inplanes"] != planes * 4
    layer = [make_bottleneck(kg, state["inplanes"], planes, stride, previous_dilation, has_ds)]
    state["inplanes"] = planes * 4
    for _ in range(1, blocks):
        layer.append(make_bottleneck(kg, state["inplanes"], planes, 1, state["dilation"], False))
    return layer


def make_fcn_resnet50_params(seed=0):
    # TODO(synk): pretrained=True weights cannot be loaded here; deterministic random init.
    kg = KeyGen(seed)
    params = {}
    params["stem"] = make_conv_bn_prepped(kg, 7, 7, 1, 64)     # modified: 1 input channel
    state = {"inplanes": 64, "dilation": 1}
    params["layer1"] = make_layer(kg, state, 64, 3)
    params["layer2"] = make_layer(kg, state, 128, 4, stride=2)
    params["layer3"] = make_layer(kg, state, 256, 6, stride=2, dilate=True)
    params["layer4"] = make_layer(kg, state, 512, 3, stride=2, dilate=True)
    # classifier head (2048 -> 512 -> COLORS)
    params["cls1"] = make_conv_bn_prepped(kg, 3, 3, 2048, 512)
    w2 = make_conv_w(kg, 1, 1, 512, COLORS)
    b2 = 0.01 * jax.random.normal(kg(), (COLORS,), jnp.float32)
    params["cls2"] = prep_conv(w2, jnp.ones((COLORS,), jnp.float32), b2)
    # aux classifier head (1024 -> 256 -> COLORS)
    params["aux1"] = make_conv_bn_prepped(kg, 3, 3, 1024, 256)
    w2 = make_conv_w(kg, 1, 1, 256, COLORS)
    b2 = 0.01 * jax.random.normal(kg(), (COLORS,), jnp.float32)
    params["aux2"] = prep_conv(w2, jnp.ones((COLORS,), jnp.float32), b2)
    return params


# --------------------------------------------------------------------------
# Forward pass
# --------------------------------------------------------------------------
def apply_bottleneck(x, p):
    out = conv_bn(x, p["c1"], 1, 0, 1, relu=True)
    out = conv_bn(out, p["c2"], p["stride"], p["dilation"], p["dilation"], relu=True)
    if "cd" in p:
        identity = conv_bn(x, p["cd"], p["stride"], 0, 1, relu=False)
    else:
        identity = x
    # conv3 + BN + residual add + ReLU, all fused into one matmul epilogue.
    return conv_bn(out, p["c3"], 1, 0, 1, relu=True, residual=identity)


def fcn_head(x, c1, c2):
    h = conv_bn(x, c1, 1, 1, 1, relu=True)
    # TODO(synk): nn.Dropout(0.1) treated as identity (eval-mode semantics).
    return conv_bn(h, c2, 1, 0, 1, relu=False)   # 1x1 conv with bias


def fcn_resnet50_forward(params, x_nchw):
    N, C, H, W = x_nchw.shape
    x = jnp.transpose(x_nchw, (0, 2, 3, 1)).astype(jnp.float32)   # NCHW -> NHWC
    x = conv_bn(x, params["stem"], 2, 3, 1, relu=True)
    x = maxpool2d_3x3_s2_p1(x)
    for p in params["layer1"]:
        x = apply_bottleneck(x, p)
    for p in params["layer2"]:
        x = apply_bottleneck(x, p)
    for p in params["layer3"]:
        x = apply_bottleneck(x, p)
    aux_feat = x                                                   # IntermediateLayerGetter 'aux'
    for p in params["layer4"]:
        x = apply_bottleneck(x, p)                                 # 'out'
    out = fcn_head(x, params["cls1"], params["cls2"])
    aux = fcn_head(aux_feat, params["aux1"], params["aux2"])
    out = bilinear_resize(out, H, W)
    aux = bilinear_resize(aux, H, W)
    return {"out": jnp.transpose(out, (0, 3, 1, 2)),               # back to NCHW
            "aux": jnp.transpose(aux, (0, 3, 1, 2))}


# --------------------------------------------------------------------------
if __name__ == "__main__":
    params = make_fcn_resnet50_params(seed=0)
    x = jax.random.normal(jax.random.PRNGKey(0), (1, 1, 32, 32), jnp.float32)  # NCHW, 1 channel
    result = fcn_resnet50_forward(params, x)
    result = jax.block_until_ready(result)
    assert result["out"].shape == (1, COLORS, 32, 32)
    assert result["aux"].shape == (1, COLORS, 32, 32)
    assert bool(jnp.all(jnp.isfinite(result["out"])))
    assert bool(jnp.all(jnp.isfinite(result["aux"])))
    print("KERNEL_OK")
</pallas_src>

<mosaic_0001>
module attributes {stable_mosaic.version = 11 : i64} {
  func.func @mm_kernel_1k(%arg0: i32, %arg1: i32, %arg2: memref<128x128xbf16, #tpu.memory_space<vmem>>, %arg3: memref<128x128xbf16, #tpu.memory_space<vmem>>, %arg4: memref<1x128xf32, #tpu.memory_space<vmem>>, %arg5: memref<1x128xf32, #tpu.memory_space<vmem>>, %arg6: memref<128x128xf32, #tpu.memory_space<vmem>>) attributes {dimension_semantics = [#tpu.dimension_semantics<parallel>, #tpu.dimension_semantics<parallel>], iteration_bounds = array<i64: 2, 1>, scalar_prefetch = 0 : i64, scratch_operands = 0 : i64, tpu.core_type = #tpu.core_type<tc>, window_params = [{transform_indices = @transform_0, window_bounds = array<i64: 128, 128>}, {transform_indices = @transform_1, window_bounds = array<i64: 128, 128>}, {transform_indices = @transform_2, window_bounds = array<i64: 1, 128>}, {transform_indices = @transform_3, window_bounds = array<i64: 1, 128>}, {transform_indices = @transform_4, window_bounds = array<i64: 128, 128>}]} {
    %c0 = arith.constant 0 : index
    %c0_0 = arith.constant 0 : index
    %0 = vector.load %arg2[%c0, %c0_0] : memref<128x128xbf16, #tpu.memory_space<vmem>>, vector<128x128xbf16>
    %c0_1 = arith.constant 0 : index
    %c0_2 = arith.constant 0 : index
    %1 = vector.load %arg3[%c0_1, %c0_2] : memref<128x128xbf16, #tpu.memory_space<vmem>>, vector<128x128xbf16>
    %cst = arith.constant dense<0.000000e+00> : vector<128x128xf32>
    %2 = tpu.matmul %0, %1, %cst {dimension_numbers = #tpu.dot_dimension_numbers<[1], [0], [0], [1], [0, 0, 1, 1], [], []>} : vector<128x128xbf16>, vector<128x128xbf16>, vector<128x128xf32> -> vector<128x128xf32>
    %c0_3 = arith.constant 0 : index
    %c0_4 = arith.constant 0 : index
    %3 = vector.load %arg4[%c0_3, %c0_4] : memref<1x128xf32, #tpu.memory_space<vmem>>, vector<1x128xf32>
    %4 = vector.broadcast %3 : vector<1x128xf32> to vector<128x128xf32>
    %5 = arith.mulf %2, %4 : vector<128x128xf32>
    %c0_5 = arith.constant 0 : index
    %c0_6 = arith.constant 0 : index
    %6 = vector.load %arg5[%c0_5, %c0_6] : memref<1x128xf32, #tpu.memory_space<vmem>>, vector<1x128xf32>
    %7 = vector.broadcast %6 : vector<1x128xf32> to vector<128x128xf32>
    %8 = arith.addf %5, %7 : vector<128x128xf32>
    %cst_7 = arith.constant 0.000000e+00 : f32
    %9 = vector.broadcast %cst_7 : f32 to vector<128x128xf32>
    %10 = arith.maximumf %8, %9 : vector<128x128xf32>
    %c0_8 = arith.constant 0 : index
    %c0_9 = arith.constant 0 : index
    %11 = vector.load %arg6[%c0_8, %c0_9] : memref<128x128xf32, #tpu.memory_space<vmem>>, vector<128x128xf32>
    tpu.vector_store %arg6[%c0_8, %c0_9], %10 {strides = array<i32>} : memref<128x128xf32, #tpu.memory_space<vmem>>, vector<128x128xf32>,
    return
  }
  func.func @transform_0(%arg0: i32, %arg1: i32) -> (i32, i32) {
    %c0_i32 = arith.constant 0 : i32
    %c0_i32_0 = arith.constant 0 : i32
    return %arg0, %c0_i32 : i32, i32
  }
  func.func @transform_1(%arg0: i32, %arg1: i32) -> (i32, i32) {
    %c0_i32 = arith.constant 0 : i32
    %c0_i32_0 = arith.constant 0 : i32
    return %c0_i32, %arg1 : i32, i32
  }
  func.func @transform_2(%arg0: i32, %arg1: i32) -> (i32, i32) {
    %c0_i32 = arith.constant 0 : i32
    %c0_i32_0 = arith.constant 0 : i32
    return %c0_i32, %arg1 : i32, i32
  }
  func.func @transform_3(%arg0: i32, %arg1: i32) -> (i32, i32) {
    %c0_i32 = arith.constant 0 : i32
    %c0_i32_0 = arith.constant 0 : i32
    return %c0_i32, %arg1 : i32, i32
  }
  func.func @transform_4(%arg0: i32, %arg1: i32) -> (i32, i32) {
    %c0_i32 = arith.constant 0 : i32
    return %arg0, %arg1 : i32, i32
  }
}

</mosaic_0001>

<bundles_post_ra>
// kernel: tpu_custom_call.1
= control target key start
LH: loop header
LB: loop body
LE: loop exit
PB: predicated region body
PF: predicated region fallthrough
CT: control target
= control target key end

     0   :  { %9 = vsyncpa [#allocation3], 0  ;;  %s1391_s0 = inlined_call_operand.hbm [shape: bf16[256,128], index: 0, kind: input, shape index: {}]   ;;  %s1392_s1 = inlined_call_operand.hbm [shape: bf16[128,128], index: 1, kind: input, shape index: {}]   ;;  %s1393_s2 = inlined_call_operand.vmem [shape: f32[1,128], index: 2, kind: input, shape index: {}]   ;;  %s1394_s3 = inlined_call_operand.vmem [shape: f32[1,128], index: 3, kind: input, shape index: {}]   ;;  %s1395_s4 = inlined_call_operand.hbm [shape: f32[256,128], index: 4, kind: output, shape index: {}]  }
   0x1   :  { %11 = vsyncpa [#allocation3 + $0x1], 0 }
   0x2   :  { %12 = vsyncpa [#allocation6], 0 }
   0x3   :  { %13 = vsyncpa [#allocation4], 0 }
   0x4   :  { %15 = vsyncpa [#allocation4 + $0x1], 0  ;;  %s1094_s15 = smov 0   ;;  %s1096_s16 = smov 0  }
   0x5   :  { %s1098_s17 = smov 0   ;;  %s1100_s18 = smov 0  }
   0x6   :  { %s1102_s19 = smov 0   ;;  %s1104_s20 = smov 0  }
   0x7 LB: > { %s720_s21 = sadd.s32 4294967295, %s1060_s20   ;;  %s721_s22 = sadd.s32 4294967294, %s1060_s20   ;;  %s1060_s20 = sphi %s1104_s20, %s21_s20   ;;  %s1056_s19 = sphi %s1102_s19, %s1419_s19   ;;  %s1052_s18 = sphi %s1100_s18, %s1418_s18   ;;  %s1048_s17 = sphi %s1098_s17, %s1417_s17   ;;  %s1044_s16 = sphi %s1096_s16, %s1416_s16   ;;  %s1040_s15 = sphi %s1094_s15, %s1415_s15  }
   0x8   : > { %p53_p0 = scmp.ne.s32.totalorder %s1044_s16, %s1040_s15  ;;  %p1128_p1 = scmp.eq.s32.totalorder %s720_s21, 0 }
   0x9   : > { %p1132_p2 = scmp.eq.s32.totalorder %s720_s21, 1  ;;  %p163_p3 = scmp.eq.s32.totalorder %s721_s22, 1 }
   0xa   : > { %s1400_s23 = scalar_select %p1128_p1, 1, 0 }
   0xb   : > { %s1401_s24 = scalar_select %p1132_p2, 1, 0 }
   0xc   : > { %p1138_p4 = por %p1128_p1, %p53_p0  ;;  %p722_p5 = scmp.ge.s32.totalorder %s1060_s20, 1 }
   0xd   : > { %p1143_p6 = por %p163_p3, %p53_p0  ;;  %p170_p7 = scmp.lt.s32.totalorder %s1060_s20, 3 }
   0xe   : > { %s1402_s25 = scalar_select %p1138_p4, 1, 0 }
   0xf   : > { %s1403_s26 = scalar_select %p1143_p6, 1, 0 }
  0x10   : > { %p1148_p8 = pnand %p722_p5, %p170_p7  ;;  %s1062_s28 = smov [#allocation5]  }
  0x11   : > { %s184_s29 = sshll.u32 %s1062_s28, 4  ;;  %s33_s5 = sadd.s32 1, %s1056_s19  ;;  %s185_s29 = int_to_ptr.vmem [resolvable:$true] %s184_s29 }
  0x12   : > { %s1404_s27 = scalar_select %p1148_p8, 1, 0 }
  0x13   : > { %p831_p9 = pneg %p1148_p8  ;;  %s916_s8 = scalar_lea.hbm %s1392_s1, 1024 }
  0x14   : > { %p917_p12 = scmp.ne.s32.totalorder %s1392_s1, %s916_s8  ;;  %p923_p5 = scmp.lt.u32.totalorder %s916_s8, %s1392_s1 }
  0x15   : > { %p1157_p11 = pnand %p831_p9, %p1128_p1 }
  0x17   : > { %p918_p13 = pneg %p1157_p11 }
  0x19   : > { %p919_p0 = pnand %p918_p13, %p917_p12 }
  0x1b   : > { %p920_p3 = pneg %p919_p0 }
  0x1d   : > { %p925_p7 = pnand %p923_p5, %p920_p3 }
  0x1f   : > { %928 = shalt.err (!%p925_p7)
}
  0x20   : > { %s929_s13 = scalar_lea.vmem %s185_s29, 1024  ;;  %p937_p1 = scmp.lt.s32.totalorder %s185_s29, %s185_s29 }
  0x21   : > { %p930_p9 = scmp.ne.s32.totalorder %s185_s29, %s929_s13  ;;  %p938_p4 = scmp.lt.s32.totalorder %s929_s13, %s929_s13 }
  0x23   : > { %p932_p10 = pnand %p930_p9, %p918_p13  ;;  %p939_p8 = por %p938_p4, %p937_p1 }
  0x25   : > { %p933_p6 = pneg %p932_p10 }
  0x27   : > { %p940_p2 = pnand %p939_p8, %p933_p6 }
  0x29   : > { %943 = shalt.err (!%p940_p2)
}
  0x2a   : > { %s1063_s14 = smov 64   ;;  %s1064_s21 = smov 4  }
  0x2b   : > { %834 = dma.hbm_to_vmem [thread:$0]  (!%p1157_p11), %s1392_s1, 1024, %s185_s29, [#allocation6], %s1063_s14, %s1063_s14, %s1064_s21  }
  0x2c   : > { %p35_p1 = scmp.ge.s32.totalorder %s33_s5, 2  ;;  %s40_s6 = sadd.s32 1, %s1048_s17 }
  0x2d   : > { %p47_p2 = scmp.ne.s32.totalorder %s1048_s17, %s1044_s16  ;;  %p48_p4 = scmp.eq.s32.totalorder %s1060_s20, 0 }
  0x2e   : > { %s1421_s5 = smov (%p35_p1, %s33_s5), 0  ;;  %p1407_p8 = scmp.ne.s32.totalorder %s1401_s24, 0 }
  0x2f   : > { %p1187_p6 = por %p48_p4, %p47_p2  ;;  %s37_s8 = ssub.s32 %s1056_s19, %s1421_s5 }
  0x30   : > { %p1193_p10 = por %p1407_p8, %p47_p2  ;;  %p844_p12 = scmp.lt.s32.totalorder %s1060_s20, 2 }
  0x31   : > { %p38_p11 = scmp.eq.s32.totalorder %s37_s8, 0  ;;  %s210_s29 = sand.u32 1, %s1048_s17  }
  0x32   : > { %s727_s9 = sshll.u32 %s210_s29, 6  ;;  %s757_s11 = sshll.u32 %s1056_s19, 10 }
  0x33   : > { %s1202_s10 = scalar_select %p38_p11, %s1048_s17, %s40_s6  }
  0x34   : > { %s1208_s22 = scalar_lea.hbm %s1391_s0, %s757_s11  ;;  %s214_s24 = scalar_lea.vmem [#allocation2], %s727_s9 }
  0x35   : > { %s221_s28 = sshll.u32 %s214_s24, 4  ;;  %p1214_p13 = pnand %p844_p12, %p1187_p6  ;;  %s1210_s28 = int_to_ptr.vmem [resolvable:$true] %s221_s28 }
  0x36   : > { %s1218_s6 = scalar_lea.sflag [#allocation3], %s210_s29  ;;  %s944_s12 = scalar_lea.hbm %s1208_s22, 1024 }
  0x37   : > { %p945_p0 = scmp.ne.s32.totalorder %s1208_s22, %s944_s12  ;;  %p946_p3 = pneg %p1214_p13 }
  0x38   : > { %s949_s7 = scalar_lea.hbm %s1391_s0, 2048  ;;  %p950_p9 = scmp.lt.u32.totalorder %s1208_s22, %s1391_s0 }
  0x39   : > { %p947_p5 = pnand %p946_p3, %p945_p0  ;;  %p951_p1 = scmp.lt.u32.totalorder %s949_s7, %s944_s12 }
  0x3a   : > { %p953_p4 = scmp.lt.u32.totalorder %s944_s12, %s1208_s22 }
  0x3b   : > { %p948_p7 = pneg %p947_p5  ;;  %p952_p2 = por %p951_p1, %p950_p9 }
  0x3d   : > { %p954_p6 = por %p953_p4, %p952_p2 }
  0x3f   : > { %p955_p8 = pnand %p954_p6, %p948_p7 }
  0x41   : > { %958 = shalt.err (!%p955_p8)
}
  0x42   : > { %s959_s29 = scalar_lea.vmem %s1210_s28, 1024  ;;  %s1065_s9 = smov [#allocation2]  }
  0x43   : > { %p960_p12 = scmp.ne.s32.totalorder %s1210_s28, %s959_s29  ;;  %s964_s11 = sshll.u32 %s1065_s9, 4  ;;  %s965_s11 = int_to_ptr.vmem [resolvable:$false] %s964_s11 }
  0x44   : > { %s966_s13 = scalar_lea.vmem %s965_s11, 2048  ;;  %p967_p5 = scmp.lt.s32.totalorder %s1210_s28, %s965_s11 }
  0x45   : > { %p962_p11 = pnand %p960_p12, %p946_p3  ;;  %p968_p9 = scmp.lt.s32.totalorder %s966_s13, %s959_s29 }
  0x47   : > { %p963_p0 = pneg %p962_p11  ;;  %p969_p1 = por %p968_p9, %p967_p5 }
  0x49   : > { %p970_p2 = pnand %p969_p1, %p963_p0 }
  0x4b   : > { %973 = shalt.err (!%p970_p2)
}
  0x4c   : > { %838 = dma.hbm_to_vmem [thread:$0]  (!%p1214_p13), %s1208_s22, 1024, %s1210_s28, %s1218_s6, %s1063_s14, %s1063_s14, %s1064_s21  }
  0x4d   : > { %p1410_p3 = scmp.ne.s32.totalorder %s1404_s27, 0 }
  0x4e   : > { %s1252_s12 = sand.u32 (!%p1410_p3), 1, %s1044_s16   ;;  %p1411_p7 = scmp.ne.s32.totalorder (!%p1410_p3), %s1402_s25, 0 }
  0x4f   : > { %233 = sbr.rel (%p1410_p3) target bundleno = 367 (0x16f), region = 36  ;;  %s731_s7 = sshll.u32 (!%p1410_p3), %s1252_s12, 6 }
  0x50   : > { %s236_s24 = scalar_lea.sflag (!%p1410_p3), [#allocation3], %s1252_s12  ;;  %s1256_s29 = scalar_lea.vmem (!%p1410_p3), [#allocation2], %s731_s7 }
  0x56   : > { %1027 = dma.done.wait (%p1411_p7), %s236_s24, 1024  }
  0x57   : > { %1029 = vsyncadd (%p1411_p7), %s236_s24, 4294966272  ;;  %p1412_p13 = scmp.ne.s32.totalorder %s1400_s23, 0 }
  0x59   : > { %1031 = dma.done.wait (%p1412_p13), [#allocation6], 1024  }
  0x5a   : > { %1033 = vsyncadd (%p1412_p13), [#allocation6], 4294966272  ;;  %v900_v0 = vld [vmem:[#allocation5] sm:$0xff]   ;;  %v901_v1 = vld [vmem:[#allocation5 + $0x8] sm:$0xff]   ;;  %s733_s21 = sshll.u32 %s1252_s12, 7  ;;  %s758_s28 = sshll.u32 %s1052_s18, 11 }
  0x5b   : > { %775 = vmatprep.subr.bf16.mxu0 %v900_v0  ;;  %807 = vmatprep.subr.bf16.mxu1 %v900_v0  ;;  %v902_v2 = vld [vmem:[#allocation5 + $0x10] sm:$0xff]   ;;  %v903_v3 = vld [vmem:[#allocation5 + $0x18] sm:$0xff]   ;;  %v908_v4 = vld [vmem:[%s1256_s29] sm:$0xff]   ;;  %s1301_s22 = scalar_lea.vmem [#allocation7], %s733_s21  ;;  %s1334_s9 = scalar_lea.hbm %s1395_s4, %s758_s28 }
  0x5c   : > { %776 = vmatpush3.bf16.msra.mxu0 %v900_v0  ;;  %815 = vmatpush3.bf16.msra.mxu1 %v900_v0  ;;  %v909_v5 = vld [vmem:[%s1256_s29 + $0x20] sm:$0xff]   ;;  %v905_v7 = vld [vmem:[#allocation5 + $0x28] sm:$0xff]   ;;  %v906_v8 = vld [vmem:[#allocation5 + $0x30] sm:$0xff]   ;;  %s601_s8 = sshll.u32 %s1301_s22, 4  ;;  %s587_s11 = scalar_lea.sflag [#allocation4], %s1252_s12  ;;  %s1336_s8 = int_to_ptr.vmem [resolvable:$true] %s601_s8 }
  0x5d   : > { %777 = vmatprep.subr.bf16.mxu0 %v901_v1  ;;  %808 = vmatprep.subr.bf16.mxu1 %v901_v1  ;;  %v904_v6 = vld [vmem:[#allocation5 + $0x20] sm:$0xff]   ;;  %v907_v9 = vld [vmem:[#allocation5 + $0x38] sm:$0xff]   ;;  %v910_v10 = vld [vmem:[%s1256_s29 + $0x8] sm:$0xff]   ;;  %s974_s13 = scalar_lea.vmem %s1336_s8, 2048  ;;  %s1066_s7 = smov [#allocation7]  }
  0x5e   : > { %791 = vmatprep.mubr.bf16.mxu0 %v908_v4  ;;  %799 = vmatprep.mubr.bf16.mxu1 %v909_v5  ;;  %v911_v11 = vld [vmem:[%s1256_s29 + $0x28] sm:$0xff]   ;;  %v912_v12 = vld [vmem:[%s1256_s29 + $0x10] sm:$0xff]   ;;  %v914_v14 = vld [vmem:[%s1256_s29 + $0x18] sm:$0xff]   ;;  %p975_p4 = scmp.ne.s32.totalorder %s1336_s8, %s974_s13  ;;  %s978_s24 = sshll.u32 %s1066_s7, 4  ;;  %s979_s24 = int_to_ptr.vmem [resolvable:$false] %s978_s24 }
  0x5f   : > { %v913_v13 = vld [vmem:[%s1256_s29 + $0x30] sm:$0xff]   ;;  %v915_v15 = vld [vmem:[%s1256_s29 + $0x38] sm:$0xff]   ;;  %v1277_v16 = vld [vmem:[%s1393_s2] ss:$0 sm:$0xff]  ;;  %s980_s29 = scalar_lea.vmem %s979_s24, 4096  ;;  %p981_p12 = scmp.lt.s32.totalorder %s1336_s8, %s979_s24 }
  0x60   : > { %778 = vmatpush3.bf16.msra.mxu0 %v901_v1  ;;  %816 = vmatpush3.bf16.msra.mxu1 %v901_v1  ;;  %v1282_v18 = vld [vmem:[%s1394_s3] ss:$0 sm:$0xff]  ;;  %p976_p6 = pnand %p975_p4, %p1193_p10  ;;  %p982_p11 = scmp.lt.s32.totalorder %s980_s29, %s974_s13 }
  0x61   : > { %779 = vmatprep.subr.bf16.mxu0 %v902_v2  ;;  %809 = vmatprep.subr.bf16.mxu1 %v902_v2 }
  0x62   : > { %p977_p8 = pneg %p976_p6  ;;  %p983_p0 = por %p982_p11, %p981_p12 }
  0x64   : > { %780 = vmatpush3.bf16.msra.mxu0 %v902_v2  ;;  %817 = vmatpush3.bf16.msra.mxu1 %v902_v2  ;;  %p984_p5 = pnand %p983_p0, %p977_p8 }
  0x65   : > { %781 = vmatprep.subr.bf16.mxu0 %v903_v3  ;;  %810 = vmatprep.subr.bf16.mxu1 %v903_v3 }
  0x68   : > { %782 = vmatpush3.bf16.msra.mxu0 %v903_v3  ;;  %818 = vmatpush3.bf16.msra.mxu1 %v903_v3 }
  0x69   : > { %783 = vmatprep.subr.bf16.mxu0 %v904_v6  ;;  %811 = vmatprep.subr.bf16.mxu1 %v904_v6 }
  0x6c   : > { %784 = vmatpush3.bf16.msra.mxu0 %v904_v6  ;;  %819 = vmatpush3.bf16.msra.mxu1 %v904_v6 }
  0x6d   : > { %785 = vmatprep.subr.bf16.mxu0 %v905_v7  ;;  %812 = vmatprep.subr.bf16.mxu1 %v905_v7 }
  0x70   : > { %786 = vmatpush3.bf16.msra.mxu0 %v905_v7  ;;  %820 = vmatpush3.bf16.msra.mxu1 %v905_v7 }
  0x71   : > { %787 = vmatprep.subr.bf16.mxu0 %v906_v8  ;;  %813 = vmatprep.subr.bf16.mxu1 %v906_v8 }
  0x74   : > { %788 = vmatpush3.bf16.msra.mxu0 %v906_v8  ;;  %821 = vmatpush3.bf16.msra.mxu1 %v906_v8 }
  0x75   : > { %789 = vmatprep.subr.bf16.mxu0 %v907_v9  ;;  %814 = vmatprep.subr.bf16.mxu1 %v907_v9 }
  0x78   : > { %790 = vmatpush3.bf16.msra.mxu0 %v907_v9  ;;  %822 = vmatpush3.bf16.msra.mxu1 %v907_v9 }
  0x7b   : > { %792 = vmatmul.mubr.bf16.vlgmr.msra.gmra.mrb[0].mxu0 %v910_v10  ;;  %800 = vmatmul.mubr.bf16.vlgmr.msra.gmra.mrb[0].mxu1 %v911_v11 }
  0x7c   : > { %795 = vmatprep.mubr.bf16.mxu0 %v912_v12  ;;  %803 = vmatprep.mubr.bf16.mxu1 %v913_v13 }
  0x83   : > { %796 = vmatmul.mubr.bf16.gmra.mrb[4].mxu0 %v914_v14  ;;  %804 = vmatmul.mubr.bf16.gmra.mrb[4].mxu1 %v915_v15 }
 0x14e   : > { %v793_v17 = vpop.f32.mrb[0].mxu0  ;;  %v801_v19 = vpop.f32.mrb[0].mxu1 }
 0x14f   : > { %v517_v20 = vmul.f32 %v793_v17, %v1277_v16  ;;  %v525_v21 = vmul.f32 %v801_v19, %v1277_v16  ;;  %v445_v22 = vpop.f32.mrb[1].mxu0  ;;  %v477_v23 = vpop.f32.mrb[1].mxu1 }
 0x150   : > { %v515_v24 = vmul.f32 %v1277_v16, %v445_v22  ;;  %v523_v25 = vmul.f32 %v1277_v16, %v477_v23  ;;  %v794_v26 = vpop.f32.mrb[2].mxu0  ;;  %v802_v27 = vpop.f32.mrb[2].mxu1 }
 0x151   : > { %v540_v28 = vadd.f32 %v1282_v18, %v517_v20  ;;  %v548_v29 = vadd.f32 %v1282_v18, %v525_v21  ;;  %v518_v30 = vmul.f32 %v794_v26, %v1277_v16  ;;  %v526_v31 = vmul.f32 %v802_v27, %v1277_v16  ;;  %v448_v32 = vpop.f32.mrb[3].mxu0  ;;  %v480_v33 = vpop.f32.mrb[3].mxu1 }
 0x152   : > { %v538_v34 = vadd.f32 %v1282_v18, %v515_v24  ;;  %v546_v35 = vadd.f32 %v1282_v18, %v523_v25  ;;  %v516_v36 = vmul.f32 %v1277_v16, %v448_v32  ;;  %v524_v37 = vmul.f32 %v1277_v16, %v480_v33 }
 0x153   : > { %v556_v38 = vmax.f32 %v540_v28, 0.0  ;;  %v564_v39 = vmax.f32 %v548_v29, 0.0  ;;  %v541_v40 = vadd.f32 %v1282_v18, %v518_v30  ;;  %v549_v41 = vadd.f32 %v1282_v18, %v526_v31 }
 0x154   : > { %v554_v42 = vmax.f32 %v538_v34, 0.0  ;;  %v562_v43 = vmax.f32 %v546_v35, 0.0  ;;  %v539_v44 = vadd.f32 %v1282_v18, %v516_v36  ;;  %v547_v45 = vadd.f32 %v1282_v18, %v524_v37 }
 0x155   : > { %572 = vst [vmem:[%s1301_s22 + $0x10] sm:$0xff] %v556_v38  ;;  %580 = vst [vmem:[%s1301_s22 + $0x50] sm:$0xff] %v564_v39  ;;  %v557_v46 = vmax.f32 %v541_v40, 0.0  ;;  %v565_v47 = vmax.f32 %v549_v41, 0.0 }
 0x156   : > { %570 = vst [vmem:[%s1301_s22] sm:$0xff] %v554_v42  ;;  %578 = vst [vmem:[%s1301_s22 + $0x40] sm:$0xff] %v562_v43  ;;  %v555_v48 = vmax.f32 %v539_v44, 0.0  ;;  %v563_v49 = vmax.f32 %v547_v45, 0.0  ;;  %v797_v50 = vpop.f32.mrb[4].mxu0  ;;  %v805_v51 = vpop.f32.mrb[4].mxu1 }
 0x157   : > { %573 = vst [vmem:[%s1301_s22 + $0x18] sm:$0xff] %v557_v46  ;;  %581 = vst [vmem:[%s1301_s22 + $0x58] sm:$0xff] %v565_v47  ;;  %v521_v52 = vmul.f32 %v797_v50, %v1277_v16  ;;  %v529_v53 = vmul.f32 %v805_v51, %v1277_v16  ;;  %v461_v54 = vpop.f32.mrb[5].mxu0  ;;  %v493_v55 = vpop.f32.mrb[5].mxu1 }
 0x158   : > { %571 = vst [vmem:[%s1301_s22 + $0x8] sm:$0xff] %v555_v48  ;;  %579 = vst [vmem:[%s1301_s22 + $0x48] sm:$0xff] %v563_v49  ;;  %v519_v56 = vmul.f32 %v1277_v16, %v461_v54  ;;  %v527_v57 = vmul.f32 %v1277_v16, %v493_v55  ;;  %v798_v58 = vpop.f32.mrb[6].mxu0  ;;  %v806_v59 = vpop.f32.mrb[6].mxu1 }
 0x159   : > { %v544_v60 = vadd.f32 %v1282_v18, %v521_v52  ;;  %v552_v61 = vadd.f32 %v1282_v18, %v529_v53  ;;  %v522_v62 = vmul.f32 %v798_v58, %v1277_v16  ;;  %v530_v63 = vmul.f32 %v806_v59, %v1277_v16  ;;  %v464_v0 = vpop.f32.mrb[7].mxu0  ;;  %v496_v1 = vpop.f32.mrb[7].mxu1 }
 0x15a   : > { %v542_v2 = vadd.f32 %v1282_v18, %v519_v56  ;;  %v550_v3 = vadd.f32 %v1282_v18, %v527_v57  ;;  %v520_v4 = vmul.f32 %v1277_v16, %v464_v0  ;;  %v528_v5 = vmul.f32 %v1277_v16, %v496_v1 }
 0x15b   : > { %v560_v6 = vmax.f32 %v544_v60, 0.0  ;;  %v568_v7 = vmax.f32 %v552_v61, 0.0  ;;  %v545_v8 = vadd.f32 %v1282_v18, %v522_v62  ;;  %v553_v9 = vadd.f32 %v1282_v18, %v530_v63 }
 0x15c   : > { %v558_v10 = vmax.f32 %v542_v2, 0.0  ;;  %v566_v11 = vmax.f32 %v550_v3, 0.0  ;;  %v543_v12 = vadd.f32 %v1282_v18, %v520_v4  ;;  %v551_v13 = vadd.f32 %v1282_v18, %v528_v5 }
 0x15d   : > { %576 = vst [vmem:[%s1301_s22 + $0x30] sm:$0xff] %v560_v6  ;;  %584 = vst [vmem:[%s1301_s22 + $0x70] sm:$0xff] %v568_v7  ;;  %v561_v14 = vmax.f32 %v545_v8, 0.0  ;;  %v569_v15 = vmax.f32 %v553_v9, 0.0 }
 0x15e   : > { %574 = vst [vmem:[%s1301_s22 + $0x20] sm:$0xff] %v558_v10  ;;  %582 = vst [vmem:[%s1301_s22 + $0x60] sm:$0xff] %v566_v11  ;;  %v559_v16 = vmax.f32 %v543_v12, 0.0  ;;  %v567_v17 = vmax.f32 %v551_v13, 0.0 }
 0x15f   : > { %577 = vst [vmem:[%s1301_s22 + $0x38] sm:$0xff] %v561_v14  ;;  %585 = vst [vmem:[%s1301_s22 + $0x78] sm:$0xff] %v569_v15 }
 0x160   : > { %575 = vst [vmem:[%s1301_s22 + $0x28] sm:$0xff] %v559_v16  ;;  %583 = vst [vmem:[%s1301_s22 + $0x68] sm:$0xff] %v567_v17 }
 0x161   : > { %987 = shalt.err (!%p984_p5)
}
 0x162   : > { %s988_s23 = scalar_lea.hbm %s1334_s9, 2048  ;;  %s992_s14 = scalar_lea.hbm %s1395_s4, 4096 }
 0x163   : > { %p989_p9 = scmp.ne.s32.totalorder %s1334_s9, %s988_s23  ;;  %p993_p3 = scmp.lt.u32.totalorder %s1334_s9, %s1395_s4 }
 0x164   : > { %p994_p7 = scmp.lt.u32.totalorder %s992_s14, %s988_s23  ;;  %p996_p4 = scmp.lt.u32.totalorder %s988_s23, %s1334_s9 }
 0x165   : > { %p990_p1 = pnand %p989_p9, %p1193_p10 }
 0x166   : > { %p995_p13 = por %p994_p7, %p993_p3 }
 0x167   : > { %p991_p2 = pneg %p990_p1 }
 0x168   : > { %p997_p6 = por %p996_p4, %p995_p13 }
 0x16a   : > { %p998_p8 = pnand %p997_p6, %p991_p2 }
 0x16c   : > { %1001 = shalt.err (!%p998_p8)
}
 0x16d   : > { %s1067_s28 = smov 128   ;;  %s1068_s18 = smov 8  }
 0x16e   : > { %829 = dma.vmem_to_hbm [thread:$0]  (%p1193_p10), %s1336_s8, 2048, %s1334_s9, %s587_s11, %s1067_s28, %s1067_s28, %s1068_s18  }
 0x16f PF: > { %s616_s6 = sand.u32 1, %s1040_s15   ;;  %p1413_p12 = scmp.ne.s32.totalorder %s1403_s26, 0 }
 0x170   : > { %p1414_p11 = scmp.ge.s32.totalorder %s1060_s20, 2  ;;  %s617_s13 = scalar_lea.sflag [#allocation4], %s616_s6 }
 0x172   : > { %p840_p0 = pnand %p1414_p11, %p1413_p12 }
 0x174   : > { %1035 = dma.done.wait (!%p840_p0), %s617_s13, 2048  }
 0x175   : > { %1037 = vsyncadd (!%p840_p0), %s617_s13, 4294965248  ;;  %s21_s20 = sadd.s32 1, %s1060_s20   ;;  %s1415_s15 = smov %s1044_s16 }
 0x176   : > { %p18_p5 = scmp.ge.s32.totalorder %s21_s20, 4   ;;  %s1416_s16 = smov %s1048_s17 }
 0x177   : > { %s1417_s17 = smov %s1202_s10  ;;  %s1418_s18 = smov %s1056_s19 }
 0x178   : > { %s1419_s19 = smov %s1421_s5  ;;  %20 = sbr.rel (!%p18_p5) target bundleno = 7 (0x7), region = 92 }
 0x17f   :  { %622 = vsyncpa [#allocation3], 1 }
 0x180   :  { %624 = vsyncpa [#allocation3 + $0x1], 1 }
 0x181   :  { %625 = vsyncpa [#allocation6], 1 }
 0x182   :  { %626 = vsyncpa [#allocation4], 1 }
 0x183   :  { %628 = vsyncpa [#allocation4 + $0x1], 1 }

</bundles_post_ra>
